<compile_context>
chip_gen: v7x
topology: tpu7x:2x2x1
jax: 0.10.0
libtpu: 0.0.40
codegen_flags: <defaults>
</compile_context>

<pallas_src>
import functools

import jax
import jax.numpy as jnp
from jax.experimental import pallas as pl
from jax.experimental.pallas import tpu as pltpu


def _round_up(x, m):
    return (x + m - 1) // m * m


def emitter_kernel(z_ref, w1_ref, b1_ref, w2_ref, b2_ref, wh_ref, bh_ref,
                   loc_ref, scale_ref, *, output_dim):
    z = z_ref[...]

    h1 = jnp.dot(z, w1_ref[...], preferred_element_type=jnp.float32) + b1_ref[...]
    h1 = jnp.maximum(h1, 0.0)                                   # ReLU

    h2 = jnp.dot(h1, w2_ref[...], preferred_element_type=jnp.float32) + b2_ref[...]
    h2 = jnp.maximum(h2, 0.0)                                   # ReLU

    # Fused loc|scale head: columns [0, O) are loc, [O, 2O) are scale.
    head = jnp.dot(h2, wh_ref[...], preferred_element_type=jnp.float32) + bh_ref[...]

    loc_ref[...] = head[:, :output_dim].astype(loc_ref.dtype)
    scale_ref[...] = jnp.exp(head[:, output_dim:]).astype(scale_ref.dtype)


def pack_params(params):
    """One-time parameter preparation: fuse the loc/scale heads.

    params: dict with w1,b1,w2,b2,w_loc,b_loc,w_scale,b_scale; weights stored
    as [in_features, out_features], biases as [1, out_features].
    """
    f32 = lambda a: jnp.asarray(a, jnp.float32)
    w_head = jnp.concatenate([f32(params["w_loc"]), f32(params["w_scale"])], axis=1)
    b_head = jnp.concatenate([f32(params["b_loc"]), f32(params["b_scale"])], axis=1)
    return dict(w1=f32(params["w1"]), b1=f32(params["b1"]),
                w2=f32(params["w2"]), b2=f32(params["b2"]),
                w_head=w_head, b_head=b_head)


@functools.partial(jax.jit, static_argnames=("block_rows",))
def emitter_forward(z_t, packed, *, block_rows=2048):
    """z_t: [rows, z_dim] (fold time*batch into `rows` upstream if desired).

    packed: output of pack_params(params).
    Returns (x_loc, x_scale), each [rows, output_dim], float32.
    """
    z_t = z_t.astype(jnp.float32)
    rows, z_dim = z_t.shape
    emission_dim = packed["w1"].shape[1]
    head_dim = packed["w_head"].shape[1]
    output_dim = head_dim // 2

    # --- Row block: multiple of 8, capped so grid has >= 2 steps when it can
    #     (v7x megacore), and never smaller than 8 (ragged blocks are masked).
    two_tc_cap = _round_up(max(1, -(-rows // 2)), 8)
    bm = max(8, min(_round_up(block_rows, 8), two_tc_cap))
    grid = (pl.cdiv(rows, bm),)

    row_spec = pl.BlockSpec((bm, z_dim), lambda i: (i, 0))
    out_spec = pl.BlockSpec((bm, output_dim), lambda i: (i, 0))
    # Weights/biases: constant block index -> stay resident, fetched once.
    resident = lambda shape: pl.BlockSpec(shape, lambda i: (0, 0))

    flops = 2 * rows * (z_dim * emission_dim
                        + emission_dim * emission_dim
                        + emission_dim * head_dim)
    bytes_accessed = 4 * (rows * z_dim
                          + z_dim * emission_dim + emission_dim
                          + emission_dim * emission_dim + emission_dim
                          + emission_dim * head_dim + head_dim
                          + rows * head_dim)

    x_loc, x_scale = pl.pallas_call(
        functools.partial(emitter_kernel, output_dim=output_dim),
        out_shape=(jax.ShapeDtypeStruct((rows, output_dim), jnp.float32),
                   jax.ShapeDtypeStruct((rows, output_dim), jnp.float32)),
        grid=grid,
        in_specs=[
            row_spec,
            resident((z_dim, emission_dim)),         # w1
            resident((1, emission_dim)),             # b1
            resident((emission_dim, emission_dim)),  # w2
            resident((1, emission_dim)),             # b2
            resident((emission_dim, head_dim)),      # fused head weight
            resident((1, head_dim)),                 # fused head bias
        ],
        out_specs=(out_spec, out_spec),
        compiler_params=pltpu.CompilerParams(
            dimension_semantics=("parallel",)),      # v7x: shard rows over 2 TCs
        cost_estimate=pl.CostEstimate(
            flops=flops,
            transcendentals=rows * output_dim,
            bytes_accessed=bytes_accessed),
    )(
        z_t,
        packed["w1"], packed["b1"],
        packed["w2"], packed["b2"],
        packed["w_head"], packed["b_head"],
    )
    return x_loc, x_scale


def init_params(key, z_dim, emission_dim, output_dim):
    """Deterministic synthetic init (PyTorch-Linear-like uniform fan-in scaling)."""
    ks = jax.random.split(key, 8)

    def lin(kw, kb, fan_in, fan_out):
        bound = 1.0 / jnp.sqrt(fan_in)
        # Stored as [in, out] so the kernel computes x @ W directly.
        w = jax.random.uniform(kw, (fan_in, fan_out), jnp.float32, -bound, bound)
        b = jax.random.uniform(kb, (1, fan_out), jnp.float32, -bound, bound)
        return w, b

    w1, b1 = lin(ks[0], ks[1], z_dim, emission_dim)
    w2, b2 = lin(ks[2], ks[3], emission_dim, emission_dim)
    wl, bl = lin(ks[4], ks[5], emission_dim, output_dim)
    ws, bs = lin(ks[6], ks[7], emission_dim, output_dim)
    return dict(w1=w1, b1=b1, w2=w2, b2=b2,
                w_loc=wl, b_loc=bl, w_scale=ws, b_scale=bs)


def emitter_reference(z_t, p):
    h1 = jnp.maximum(z_t @ p["w1"] + p["b1"], 0.0)
    h2 = jnp.maximum(h1 @ p["w2"] + p["b2"], 0.0)
    x_loc = h2 @ p["w_loc"] + p["b_loc"]
    x_scale = jnp.exp(h2 @ p["w_scale"] + p["b_scale"])
    return x_loc, x_scale


if __name__ == "__main__":
    # Small shapes implied by the module: z_t is [rows, z_dim] (rows = time*batch).
    rows, z_dim, emission_dim, output_dim = 40, 32, 32, 16

    key = jax.random.PRNGKey(0)
    k_z, k_p = jax.random.split(key)

    z_t = jax.random.normal(k_z, (rows, z_dim), dtype=jnp.float32)
    params = init_params(k_p, z_dim, emission_dim, output_dim)
    packed = pack_params(params)     # one-time head fusion, outside the hot path

    # Small row block so the demo exercises a multi-step grid and a ragged
    # (masked) last block (40 rows -> blocks of 16 -> grid of 3).
    x_loc, x_scale = emitter_forward(z_t, packed, block_rows=16)
    jax.block_until_ready((x_loc, x_scale))

    # Also exercise the default (large-block) path once.
    x_loc_d, x_scale_d = emitter_forward(z_t, packed)
    jax.block_until_ready((x_loc_d, x_scale_d))

    # Correctness check against a pure-JAX reference of the PyTorch forward.
    ref_loc, ref_scale = emitter_reference(z_t, params)
    assert x_loc.shape == ref_loc.shape and x_scale.shape == ref_scale.shape
    assert jnp.allclose(x_loc, ref_loc, atol=1e-5, rtol=1e-5)
    assert jnp.allclose(x_scale, ref_scale, atol=1e-5, rtol=1e-5)
    assert jnp.allclose(x_loc_d, ref_loc, atol=1e-5, rtol=1e-5)
    assert jnp.allclose(x_scale_d, ref_scale, atol=1e-5, rtol=1e-5)

    print("KERNEL_OK")
</pallas_src>

<mosaic_0001>
module attributes {stable_mosaic.version = 11 : i64} {
  func.func @emitter_kernel(%arg0: i32, %arg1: memref<16x32xf32, #tpu.memory_space<vmem>>, %arg2: memref<32x32xf32, #tpu.memory_space<vmem>>, %arg3: memref<1x32xf32, #tpu.memory_space<vmem>>, %arg4: memref<32x32xf32, #tpu.memory_space<vmem>>, %arg5: memref<1x32xf32, #tpu.memory_space<vmem>>, %arg6: memref<32x32xf32, #tpu.memory_space<vmem>>, %arg7: memref<1x32xf32, #tpu.memory_space<vmem>>, %arg8: memref<16x16xf32, #tpu.memory_space<vmem>>, %arg9: memref<16x16xf32, #tpu.memory_space<vmem>>) attributes {dimension_semantics = [#tpu.dimension_semantics<parallel>], iteration_bounds = array<i64: 3>, scalar_prefetch = 0 : i64, scratch_operands = 0 : i64, tpu.core_type = #tpu.core_type<tc>, window_params = [{transform_indices = @transform_0, window_bounds = array<i64: 16, 32>}, {pipeline_mode = #tpu.pipeline_mode<synchronous>, transform_indices = @transform_1, window_bounds = array<i64: 32, 32>}, {pipeline_mode = #tpu.pipeline_mode<synchronous>, transform_indices = @transform_2, window_bounds = array<i64: 1, 32>}, {pipeline_mode = #tpu.pipeline_mode<synchronous>, transform_indices = @transform_3, window_bounds = array<i64: 32, 32>}, {pipeline_mode = #tpu.pipeline_mode<synchronous>, transform_indices = @transform_4, window_bounds = array<i64: 1, 32>}, {pipeline_mode = #tpu.pipeline_mode<synchronous>, transform_indices = @transform_5, window_bounds = array<i64: 32, 32>}, {pipeline_mode = #tpu.pipeline_mode<synchronous>, transform_indices = @transform_6, window_bounds = array<i64: 1, 32>}, {transform_indices = @transform_7, window_bounds = array<i64: 16, 16>}, {transform_indices = @transform_8, window_bounds = array<i64: 16, 16>}]} {
    %c0 = arith.constant 0 : index
    %c0_0 = arith.constant 0 : index
    %0 = vector.load %arg1[%c0, %c0_0] : memref<16x32xf32, #tpu.memory_space<vmem>>, vector<16x32xf32>
    %c0_1 = arith.constant 0 : index
    %c0_2 = arith.constant 0 : index
    %1 = vector.load %arg2[%c0_1, %c0_2] : memref<32x32xf32, #tpu.memory_space<vmem>>, vector<32x32xf32>
    %cst = arith.constant dense<0.000000e+00> : vector<16x32xf32>
    %2 = tpu.matmul %0, %1, %cst {dimension_numbers = #tpu.dot_dimension_numbers<[1], [0], [0], [1], [0, 0, 1, 1], [], []>} : vector<16x32xf32>, vector<32x32xf32>, vector<16x32xf32> -> vector<16x32xf32>
    %c0_3 = arith.constant 0 : index
    %c0_4 = arith.constant 0 : index
    %3 = vector.load %arg3[%c0_3, %c0_4] : memref<1x32xf32, #tpu.memory_space<vmem>>, vector<1x32xf32>
    %4 = vector.broadcast %3 : vector<1x32xf32> to vector<16x32xf32>
    %5 = arith.addf %2, %4 : vector<16x32xf32>
    %cst_5 = arith.constant 0.000000e+00 : f32
    %6 = vector.broadcast %cst_5 : f32 to vector<16x32xf32>
    %7 = arith.maximumf %5, %6 : vector<16x32xf32>
    %c0_6 = arith.constant 0 : index
    %c0_7 = arith.constant 0 : index
    %8 = vector.load %arg4[%c0_6, %c0_7] : memref<32x32xf32, #tpu.memory_space<vmem>>, vector<32x32xf32>
    %cst_8 = arith.constant dense<0.000000e+00> : vector<16x32xf32>
    %9 = tpu.matmul %7, %8, %cst_8 {dimension_numbers = #tpu.dot_dimension_numbers<[1], [0], [0], [1], [0, 0, 1, 1], [], []>} : vector<16x32xf32>, vector<32x32xf32>, vector<16x32xf32> -> vector<16x32xf32>
    %c0_9 = arith.constant 0 : index
    %c0_10 = arith.constant 0 : index
    %10 = vector.load %arg5[%c0_9, %c0_10] : memref<1x32xf32, #tpu.memory_space<vmem>>, vector<1x32xf32>
    %11 = vector.broadcast %10 : vector<1x32xf32> to vector<16x32xf32>
    %12 = arith.addf %9, %11 : vector<16x32xf32>
    %cst_11 = arith.constant 0.000000e+00 : f32
    %13 = vector.broadcast %cst_11 : f32 to vector<16x32xf32>
    %14 = arith.maximumf %12, %13 : vector<16x32xf32>
    %c0_12 = arith.constant 0 : index
    %c0_13 = arith.constant 0 : index
    %15 = vector.load %arg6[%c0_12, %c0_13] : memref<32x32xf32, #tpu.memory_space<vmem>>, vector<32x32xf32>
    %cst_14 = arith.constant dense<0.000000e+00> : vector<16x32xf32>
    %16 = tpu.matmul %14, %15, %cst_14 {dimension_numbers = #tpu.dot_dimension_numbers<[1], [0], [0], [1], [0, 0, 1, 1], [], []>} : vector<16x32xf32>, vector<32x32xf32>, vector<16x32xf32> -> vector<16x32xf32>
    %c0_15 = arith.constant 0 : index
    %c0_16 = arith.constant 0 : index
    %17 = vector.load %arg7[%c0_15, %c0_16] : memref<1x32xf32, #tpu.memory_space<vmem>>, vector<1x32xf32>
    %18 = vector.broadcast %17 : vector<1x32xf32> to vector<16x32xf32>
    %19 = arith.addf %16, %18 : vector<16x32xf32>
    %20 = vector.extract_strided_slice %19 {offsets = [0, 0], sizes = [16, 16], strides = [1, 1]} : vector<16x32xf32> to vector<16x16xf32>
    %c0_17 = arith.constant 0 : index
    %c0_18 = arith.constant 0 : index
    %21 = vector.load %arg8[%c0_17, %c0_18] : memref<16x16xf32, #tpu.memory_space<vmem>>, vector<16x16xf32>
    tpu.vector_store %arg8[%c0_17, %c0_18], %20 {strides = array<i32>} : memref<16x16xf32, #tpu.memory_space<vmem>>, vector<16x16xf32>,
    %22 = vector.extract_strided_slice %19 {offsets = [0, 16], sizes = [16, 16], strides = [1, 1]} : vector<16x32xf32> to vector<16x16xf32>
    %23 = math.exp %22 : vector<16x16xf32>
    %c0_19 = arith.constant 0 : index
    %c0_20 = arith.constant 0 : index
    %24 = vector.load %arg9[%c0_19, %c0_20] : memref<16x16xf32, #tpu.memory_space<vmem>>, vector<16x16xf32>
    tpu.vector_store %arg9[%c0_19, %c0_20], %23 {strides = array<i32>} : memref<16x16xf32, #tpu.memory_space<vmem>>, vector<16x16xf32>,
    return
  }
  func.func @transform_0(%arg0: i32) -> (i32, i32) {
    %c0_i32 = arith.constant 0 : i32
    %c0_i32_0 = arith.constant 0 : i32
    return %arg0, %c0_i32 : i32, i32
  }
  func.func @transform_1(%arg0: i32) -> (i32, i32) {
    %c0_i32 = arith.constant 0 : i32
    %c0_i32_0 = arith.constant 0 : i32
    %c0_i32_1 = arith.constant 0 : i32
    return %c0_i32, %c0_i32_0 : i32, i32
  }
  func.func @transform_2(%arg0: i32) -> (i32, i32) {
    %c0_i32 = arith.constant 0 : i32
    %c0_i32_0 = arith.constant 0 : i32
    %c0_i32_1 = arith.constant 0 : i32
    return %c0_i32, %c0_i32_0 : i32, i32
  }
  func.func @transform_3(%arg0: i32) -> (i32, i32) {
    %c0_i32 = arith.constant 0 : i32
    %c0_i32_0 = arith.constant 0 : i32
    %c0_i32_1 = arith.constant 0 : i32
    return %c0_i32, %c0_i32_0 : i32, i32
  }
  func.func @transform_4(%arg0: i32) -> (i32, i32) {
    %c0_i32 = arith.constant 0 : i32
    %c0_i32_0 = arith.constant 0 : i32
    %c0_i32_1 = arith.constant 0 : i32
    return %c0_i32, %c0_i32_0 : i32, i32
  }
  func.func @transform_5(%arg0: i32) -> (i32, i32) {
    %c0_i32 = arith.constant 0 : i32
    %c0_i32_0 = arith.constant 0 : i32
    %c0_i32_1 = arith.constant 0 : i32
    return %c0_i32, %c0_i32_0 : i32, i32
  }
  func.func @transform_6(%arg0: i32) -> (i32, i32) {
    %c0_i32 = arith.constant 0 : i32
    %c0_i32_0 = arith.constant 0 : i32
    %c0_i32_1 = arith.constant 0 : i32
    return %c0_i32, %c0_i32_0 : i32, i32
  }
  func.func @transform_7(%arg0: i32) -> (i32, i32) {
    %c0_i32 = arith.constant 0 : i32
    %c0_i32_0 = arith.constant 0 : i32
    return %arg0, %c0_i32 : i32, i32
  }
  func.func @transform_8(%arg0: i32) -> (i32, i32) {
    %c0_i32 = arith.constant 0 : i32
    %c0_i32_0 = arith.constant 0 : i32
    return %arg0, %c0_i32 : i32, i32
  }
}

</mosaic_0001>

<bundles_post_ra>
// kernel: emitter_forward.1
= control target key start
LH: loop header
LB: loop body
LE: loop exit
PB: predicated region body
PF: predicated region fallthrough
CT: control target
= control target key end

     0   :  { %14 = vsyncpa [#allocation3], 0  ;;  %s1616_s27 = smov 0   ;;  %s1618_s28 = smov 0   ;;  %s1812_s0 = inlined_call_operand.vmem [shape: f32[40,32], index: 0, kind: input, shape index: {}]   ;;  %s1813_s1 = inlined_call_operand.vmem [shape: f32[32,32], index: 1, kind: input, shape index: {}]   ;;  %s1814_s2 = inlined_call_operand.vmem [shape: f32[1,32], index: 2, kind: input, shape index: {}]   ;;  %s1815_s3 = inlined_call_operand.vmem [shape: f32[32,32], index: 3, kind: input, shape index: {}]   ;;  %s1816_s4 = inlined_call_operand.vmem [shape: f32[1,32], index: 4, kind: input, shape index: {}]   ;;  %s1817_s5 = inlined_call_operand.hbm [shape: f32[32,32], index: 5, kind: input, shape index: {}]   ;;  %s1818_s6 = inlined_call_operand.vmem [shape: f32[1,32], index: 6, kind: input, shape index: {}]   ;;  %s1819_s7 = inlined_call_operand.vmem [shape: f32[40,16], index: 7, kind: output, shape index: {0}]   ;;  %s1820_s8 = inlined_call_operand.vmem [shape: f32[40,16], index: 8, kind: output, shape index: {1}]  }
   0x1   :  { %s1620_s29 = smov 0  }
   0x2 LB: > { %s1629_s30 = sadd.s32 4294967295, %s1501_s29   ;;  %s1631_s9 = sadd.s32 1, %s1501_s29   ;;  %s1501_s29 = sphi %s1620_s29, %s1833_s29   ;;  %s1497_s28 = sphi %s1618_s28, %s1832_s28   ;;  %s1493_s27 = sphi %s1616_s27, %s1831_s27  }
   0x3   : > { %s176_s10 = ssub.s32 %s1501_s29, %s1631_s9  ;;  %s179_s11 = sadd.s32 1, %s1497_s28 }
   0x4   : > { %p177_p0 = scmp.eq.s32.totalorder %s176_s10, 0  ;;  %p189_p1 = scmp.ne.s32.totalorder %s1497_s28, %s1493_s27 }
   0x5   : > { %p190_p2 = scmp.eq.s32.totalorder %s1629_s30, 2  ;;  %p1082_p3 = scmp.ge.s32.totalorder %s1501_s29, 1 }
   0x6   : > { %s1639_s12 = scalar_select %p177_p0, %s1497_s28, %s179_s11  }
   0x7   : > { %p1641_p4 = por %p190_p2, %p189_p1  ;;  %p229_p5 = scmp.lt.s32.totalorder %s1501_s29, 4 }
   0x8   : > { %p1821_p6 = scmp.eq.s32.totalorder %s1629_s30, 0  ;;  %s1567_s15 = smov [#allocation2]  }
   0x9   : > { %s1823_s13 = scalar_select %p1641_p4, 1, 0 }
   0xa   : > { %p1646_p7 = pnand %p1082_p3, %p229_p5  ;;  %s253_s16 = sshll.u32 %s1567_s15, 4  ;;  %s254_s16 = int_to_ptr.vmem [resolvable:$true] %s253_s16 }
   0xb   : > { %s1383_s20 = scalar_lea.hbm %s1817_s5, 512 }
   0xc   : > { %s1824_s14 = scalar_select %p1646_p7, 1, 0 }
   0xd   : > { %p1217_p8 = pneg %p1646_p7  ;;  %p1384_p10 = scmp.ne.s32.totalorder %s1817_s5, %s1383_s20 }
   0xe   : > { %p1390_p0 = scmp.lt.u32.totalorder %s1383_s20, %s1817_s5 }
   0xf   : > { %p1654_p9 = pnand %p1821_p6, %p1217_p8 }
  0x11   : > { %p1385_p11 = pneg %p1654_p9 }
  0x13   : > { %p1386_p12 = pnand %p1385_p11, %p1384_p10 }
  0x15   : > { %p1387_p13 = pneg %p1386_p12 }
  0x17   : > { %p1392_p1 = pnand %p1390_p0, %p1387_p13 }
  0x19   : > { %1395 = shalt.err (!%p1392_p1)
}
  0x1a   : > { %s1396_s25 = scalar_lea.vmem %s254_s16, 512  ;;  %p1404_p8 = scmp.lt.s32.totalorder %s254_s16, %s254_s16 }
  0x1b   : > { %p1397_p2 = scmp.ne.s32.totalorder %s254_s16, %s1396_s25  ;;  %p1405_p6 = scmp.lt.s32.totalorder %s1396_s25, %s1396_s25 }
  0x1d   : > { %p1399_p3 = pnand %p1397_p2, %p1385_p11  ;;  %p1406_p4 = por %p1405_p6, %p1404_p8 }
  0x1f   : > { %p1400_p5 = pneg %p1399_p3 }
  0x21   : > { %p1407_p7 = pnand %p1406_p4, %p1400_p5 }
  0x23   : > { %1410 = shalt.err (!%p1407_p7)
}
  0x24   : > { %s1568_s26 = smov 128   ;;  %s1569_s29 = smov 8  }
  0x25   : > { %1220 = dma.hbm_to_vmem [thread:$0]  (!%p1654_p9), %s1817_s5, 512, %s254_s16, [#allocation3], %s1568_s26, %s1568_s26, %s1569_s29  }
  0x26   : > { %p1826_p10 = scmp.ne.s32.totalorder %s1824_s14, 0 }
  0x27   : > { %p1827_p12 = scmp.eq.s32.totalorder (!%p1826_p10), %s1629_s30, 0 }
  0x28   : > { %289 = sbr.rel (%p1826_p10) target bundleno = 950 (0x3b6), region = 48 }
  0x2f   : > { %1488 = dma.done.wait (%p1827_p12), [#allocation3], 512   ;;  %p1828_p11 = pmov %p1827_p12 }
  0x30   : > { %s1681_s15 = sshll.u32 %s1629_s30, 1  ;;  %vm367_vm0 = vcmask 261120   ;;  %v356_v0 = vld [vmem:[%s1813_s1] sm:$0xff]  ;;  %v357_v1 = vld [vmem:[%s1813_s1 + $0x8] sm:$0xff]  ;;  %v358_v2 = vld [vmem:[%s1813_s1 + $0x10] sm:$0xff]  ;;  %s321_s25 = sand.u32 1, %s1493_s27  }
  0x31   : > { %1490 = vsyncadd (%p1828_p11), [#allocation3], 4294966784  ;;  %p335_p4 = scmp.lt.s32.totalorder %s1681_s15, 4  ;;  %v1189_v3 = vpack.c.bf16 %v357_v1, %v356_v0  ;;  %v359_v4 = vld [vmem:[%s1813_s1 + $0x18] sm:$0xff]  ;;  %v451_v7 = vld [vmem:[%s1815_s3] sm:$0xff]  ;;  %s1087_s26 = sshll.u32 %s321_s25, 4 }
  0x32   : > { %v1193_v6 = vpack.c.bf16 %v359_v4, %v358_v2  ;;  %v452_v8 = vld [vmem:[%s1815_s3 + $0x8] sm:$0xff]  ;;  %v453_v11 = vld [vmem:[%s1815_s3 + $0x10] sm:$0xff]  ;;  %v454_v12 = vld [vmem:[%s1815_s3 + $0x18] sm:$0xff]  ;;  %vm637_vm1 = vcmask 130048   ;;  %s1728_s11 = scalar_lea.vmem [#allocation4], %s1087_s26   ;;  %s1570_s27 = smov 112  }
  0x33   : > { %s336_s17 = scalar_select %p335_p4, %s1681_s15, 4  ;;  %1190 = vmatprep.subr.bf16.mxu0 %v1189_v3  ;;  %v1197_v9 = vpack.c.bf16 %v452_v8, %v451_v7  ;;  %v1201_v13 = vpack.c.bf16 %v454_v12, %v453_v11  ;;  %v545_v14 = vld [vmem:[#allocation2] sm:$0xff]  ;;  %v546_v15 = vld [vmem:[#allocation2 + $0x8] sm:$0xff]  ;;  %v547_v24 = vld [vmem:[#allocation2 + $0x10] sm:$0xff] }
  0x34   : > { %1192 = vmatpush3.bf16.msra.mxu0 %v1189_v3  ;;  %v1205_v16 = vpack.c.bf16 %v546_v15, %v545_v14  ;;  %v1091_v17 = vld [vmem:[%s1814_s2] ss:$0 sm:$0xff]  ;;  %v548_v25 = vld [vmem:[#allocation2 + $0x18] sm:$0xff]  ;;  %p1829_p6 = scmp.ne.s32.totalorder %s1823_s13, 0 }
  0x35   : > { %s1090_s18 = sshll.u32 %s336_s17, 3  ;;  %1194 = vmatprep.subr.bf16.mxu0 %v1193_v6  ;;  %1198 = vmatprep.subr.bf16.mxu1 %v1197_v9  ;;  %v1209_v26 = vpack.c.bf16 %v548_v25, %v547_v24  ;;  %v1094_v27 = vld [vmem:[%s1816_s4] ss:$0 sm:$0xff]  ;;  %s1734_s17 = scalar_lea.vmem [#allocation5], %s1087_s26  }
  0x36   : > { %s338_s16 = scalar_lea.vmem %s1812_s0, %s1090_s18  ;;  %1200 = vmatpush3.bf16.msra.mxu1 %v1197_v9  ;;  %v1097_v34 = vld [vmem:[%s1818_s6] ss:$0 sm:$0xff]  ;;  %s666_s18 = ssub.s32 (%p1829_p6), 5, %s1681_s15 }
  0x37   : > { %v354_v5 = vld [vmem:[%s338_s16] sm:$0xff]  ;;  %v355_v10 = vld [vmem:[%s338_s16 + $0x8] sm:$0xff]  ;;  %1202 = vmatprep.subr.bf16.mxu1 %v1201_v13  ;;  %s1132_s19 = sshll.u32 (%p1829_p6), %s1629_s30, 4  ;;  %p667_p7 = scmp.lt.s32.totalorder (%p1829_p6), %s666_s18, 2 }
  0x38   : > { %1164 = vmatprep.mubr.msk.f32.mxu0 %vm367_vm0, %v354_v5  ;;  %1196 = vmatpush3.bf16.msra.mxu0 %v1193_v6  ;;  %s1747_s21 = scalar_lea.vmem (%p1829_p6), %s1819_s7, %s1132_s19  }
  0x39   : > { %1206 = vmatprep.subr.bf16.mxu0 %v1205_v16 }
  0x3a   : > { %1204 = vmatpush3.bf16.msra.mxu1 %v1201_v13 }
  0x3b   : > { %1165 = vmatmul.mubr.msk.f32.vlgmr.msra.gmra.mrb[0].mxu0 %vm367_vm0, %v355_v10 }
  0x3c   : > { %1208 = vmatpush3.bf16.msra.mxu0 %v1205_v16 }
  0x3d   : > { %1210 = vmatprep.subr.bf16.mxu0 %v1209_v26 }
  0x40   : > { %1212 = vmatpush3.bf16.msra.mxu0 %v1209_v26 }
 0x10e   : > { %v1166_v18 = vpop.f32.mrb[0].mxu0 }
 0x10f   : > { %v446_v19 = vadd.f32 %v1166_v18, %v1091_v17  ;;  %v440_v20 = vpop.f32.mrb[1].mxu0 }
 0x110   : > { %v441_v21 = vadd.f32 %v1091_v17, %v440_v20 }
 0x111   : > { %v450_v23 = vmax.f32 %v446_v19, 0.0 }
 0x112   : > { %v449_v22 = vmax.f32 %v441_v21, 0.0 }
 0x114   : > { %1175 = vmatprep.mubr.msk.f32.mxu1 %vm367_vm0, %v449_v22 }
 0x115   : > { %1176 = vmatmul.mubr.msk.f32.vlgmr.msra.gmra.mrb[0].mxu1 %vm367_vm0, %v450_v23 }
 0x1e8   : > { %v1177_v28 = vpop.f32.mrb[0].mxu1 }
 0x1e9   : > { %v540_v29 = vadd.f32 %v1177_v28, %v1094_v27  ;;  %v534_v30 = vpop.f32.mrb[1].mxu1 }
 0x1ea   : > { %v535_v31 = vadd.f32 %v1094_v27, %v534_v30 }
 0x1eb   : > { %v544_v33 = vmax.f32 %v540_v29, 0.0 }
 0x1ec   : > { %v543_v32 = vmax.f32 %v535_v31, 0.0 }
 0x1ee   : > { %1186 = vmatprep.mubr.msk.f32.mxu0 %vm367_vm0, %v543_v32 }
 0x1ef   : > { %1187 = vmatmul.mubr.msk.f32.vlgmr.msra.gmra.mrb[2].mxu0 %vm367_vm0, %v544_v33 }
 0x2c2   : > { %v1188_v35 = vpop.f32.mrb[2].mxu0 }
 0x2c3   : > { %v634_v36 = vadd.f32 %v1188_v35, %v1097_v34  ;;  %v628_v37 = vpop.f32.mrb[3].mxu0 }
 0x2c4   : > { %v629_v38 = vadd.f32 %v1097_v34, %v628_v37 }
 0x2c5   : > { %639 = vst.msk [vmem:[%s1728_s11 + $0x8] sm:$0xff] %vm637_vm1, %v634_v36  ;;  %v642_v40 = vmul.f32 1.442695, %v634_v36 }
 0x2c6   : > { %v640_v39 = vmul.f32 1.442695, %v629_v38  ;;  %638 = vst.msk [vmem:[%s1728_s11] sm:$0xff] %vm637_vm1, %v629_v38 }
 0x2c8   : > { %1379 = vpow2.f32 %v640_v39 }
 0x2c9   : > { %1381 = vpow2.f32 %v642_v40 }
 0x2d2   : > { %v1380_v41 = vpop.eup %1379 }
 0x2d3   : > { %646 = vrot.lane.b32.xlu0 %v1380_v41, %s1570_s27  ;;  %v1382_v42 = vpop.eup %1381 }
 0x2d7   : > { %648 = vrot.lane.b32.xlu0 %v1382_v42, %s1570_s27 }
 0x344   : > { %664 = sbr.rel (!%p1829_p6) target bundleno = 892 (0x37c), region = 56 }
 0x345   : > { %v647_v43 = vpop.permute.xlu0 %646 }
 0x346   : > { %652 = vst.msk [vmem:[%s1734_s17] sm:$0xff] %vm637_vm1, %v647_v43 }
 0x349   : > { %v649_v44 = vpop.permute.xlu0 %648 }
 0x34a   : > { %653 = vst.msk [vmem:[%s1734_s17 + $0x8] sm:$0xff] %vm637_vm1, %v649_v44 }
 0x34b   : > { %s1835_s18 = smov (!%p667_p7, %s666_s18), 2 }
 0x34c   : > { %s1103_s22 = sshll.u32 %s1835_s18, 7 }
 0x34d   : > { %p1106_p9 = scmp.eq.s32.totalorder %s1103_s22, 0 }
 0x34e   : > { %s1753_s16 = sshrl.u32 (!%p1106_p9), %s1835_s18, 1 }
 0x34f   : > { %675 = sbr.rel (%p1106_p9) target bundleno = 892 (0x37c), region = 60  ;;  %p1107_p13 = scmp.le.s32.totalorder (!%p1106_p9), %s1753_s16, 0 }
 0x356   : > { %991 = sbr.rel (%p1107_p13) target bundleno = 871 (0x367), region = 209  ;;  %s1503_s23 = smov (!%p1107_p13), %s1747_s21  }
 0x357   : > { %s1507_s24 = smov (!%p1107_p13), %s1728_s11   ;;  %s1511_s25 = smov (!%p1107_p13), 0  }
 0x358   : > { %s1515_s26 = smov (!%p1107_p13), 0  }
 0x35d LB: >> { %v739_v45 = vld [vmem:[%s1509_s24] sm:$0xff]  ;;  %v741_v46 = vld [vmem:[%s1509_s24 + $0x8] sm:$0xff]  ;;  %s743_s29 = sadd.s32 1, %s1513_s25  ;;  %s733_s26 = sadd.s32 1, %s1517_s26   ;;  %s1517_s26 = sphi %s1515_s26, %s733_s26   ;;  %s1513_s25 = sphi %s1511_s25, %s1512_s25   ;;  %s1509_s24 = sphi %s1507_s24, %s748_s24   ;;  %s1505_s23 = sphi %s1503_s23, %s749_s23  }
 0x35e   : >> { %740 = vst [vmem:[%s1505_s23] sm:$0xff] %v739_v45  ;;  %742 = vst [vmem:[%s1505_s23 + $0x8] sm:$0xff] %v741_v46  ;;  %p744_p0 = scmp.ge.s32.totalorder %s743_s29, %s1753_s16  ;;  %p732_p1 = scmp.ge.s32.totalorder %s733_s26, %s1753_s16 }
 0x360   : >> { %s1837_s29 = smov (%p744_p0, %s743_s29), 0  ;;  %735 = sbr.rel (!%p732_p1) target bundleno = 861 (0x35d), region = 215 }
 0x361   : >> { %s1108_s10 = sshll.u32 %s1837_s29, 4  ;;  %s1512_s25 = smov %s1837_s29  }
 0x362   : >> { %s748_s24 = scalar_lea.vmem %s1728_s11, %s1108_s10 [#allocation4]   ;;  %s749_s23 = scalar_lea.vmem %s1747_s21, %s1108_s10  }
 0x367 PF: > { %s1763_s27 = sand.u32 1, %s1835_s18   ;;  %s1133_s19 = sshll.u32 %s1753_s16, 4 }
 0x368   : > { %s754_s20 = scalar_lea.vmem %s1728_s11, %s1133_s19 [#allocation4]   ;;  %s756_s14 = scalar_lea.vmem %s1747_s21, %s1133_s19  }
 0x369   : > { %p1113_p2 = scmp.le.s32.totalorder %s1763_s27, 0 }
 0x36a   : > { %s1519_s22 = smov (!%p1113_p2), %s756_s14   ;;  %s1523_s25 = smov (!%p1113_p2), %s754_s20  }
 0x36b   : > { %1005 = sbr.rel (%p1113_p2) target bundleno = 892 (0x37c), region = 220  ;;  %s1527_s23 = smov (!%p1113_p2), 0  }
 0x36c   : > { %s1531_s24 = smov (!%p1113_p2), 0  }
 0x372 LB: >> { %v766_v47 = vld [vmem:[%s1525_s25] sm:$0xff]  ;;  %s768_s18 = sadd.s32 1, %s1529_s23  ;;  %s760_s24 = sadd.s32 1, %s1533_s24   ;;  %s1533_s24 = sphi %s1531_s24, %s760_s24   ;;  %s1529_s23 = sphi %s1527_s23, %s1528_s23   ;;  %s1525_s25 = sphi %s1523_s25, %s773_s25   ;;  %s1521_s22 = sphi %s1519_s22, %s774_s22  }
 0x373   : >> { %767 = vst [vmem:[%s1521_s22] sm:$0xff] %v766_v47  ;;  %p769_p3 = scmp.ge.s32.totalorder %s768_s18, %s1763_s27  ;;  %p759_p5 = scmp.ge.s32.totalorder %s760_s24, %s1763_s27 }
 0x375   : >> { %s1839_s18 = smov (%p769_p3, %s768_s18), 0  ;;  %762 = sbr.rel (!%p759_p5) target bundleno = 882 (0x372), region = 226 }
 0x376   : >> { %s1114_s11 = sshll.u32 %s1839_s18, 3  ;;  %s1528_s23 = smov %s1839_s18  }
 0x377   : >> { %s773_s25 = scalar_lea.vmem %s754_s20, %s1114_s11 [#allocation4]   ;;  %s774_s22 = scalar_lea.vmem %s756_s14, %s1114_s11  }
 0x37c PF: > { %p1830_p8 = scmp.ne.s32.totalorder %s1823_s13, 0 }
 0x37d   : > { %s782_s21 = ssub.s32 (%p1830_p8), 5, %s1681_s15  ;;  %s1135_s16 = sshll.u32 (%p1830_p8), %s1629_s30, 4 }
 0x37e   : > { %780 = sbr.rel (!%p1830_p8) target bundleno = 950 (0x3b6), region = 108  ;;  %p783_p10 = scmp.lt.s32.totalorder (%p1830_p8), %s782_s21, 2 }
 0x37f   : > { %s1778_s10 = scalar_lea.vmem (%p1830_p8), %s1820_s8, %s1135_s16  }
 0x385   : > { %s1841_s21 = smov (!%p783_p10, %s782_s21), 2 }
 0x386   : > { %s1117_s19 = sshll.u32 %s1841_s21, 7 }
 0x387   : > { %p1120_p12 = scmp.eq.s32.totalorder %s1117_s19, 0 }
 0x388   : > { %s1784_s27 = sshrl.u32 (!%p1120_p12), %s1841_s21, 1 }
 0x389   : > { %791 = sbr.rel (%p1120_p12) target bundleno = 950 (0x3b6), region = 112  ;;  %p1121_p11 = scmp.le.s32.totalorder (!%p1120_p12), %s1784_s27, 0 }
 0x390   : > { %1019 = sbr.rel (%p1121_p11) target bundleno = 929 (0x3a1), region = 231  ;;  %s1535_s30 = smov (!%p1121_p11), %s1778_s10  }
 0x391   : > { %s1539_s13 = smov (!%p1121_p11), %s1734_s17   ;;  %s1543_s15 = smov (!%p1121_p11), 0  }
 0x392   : > { %s1547_s20 = smov (!%p1121_p11), 0  }
 0x397 LB: >> { %v855_v48 = vld [vmem:[%s1541_s13] sm:$0xff]  ;;  %v857_v49 = vld [vmem:[%s1541_s13 + $0x8] sm:$0xff]  ;;  %s859_s14 = sadd.s32 1, %s1545_s15  ;;  %s849_s20 = sadd.s32 1, %s1549_s20   ;;  %s1549_s20 = sphi %s1547_s20, %s849_s20   ;;  %s1545_s15 = sphi %s1543_s15, %s1544_s15   ;;  %s1541_s13 = sphi %s1539_s13, %s864_s13   ;;  %s1537_s30 = sphi %s1535_s30, %s865_s30  }
 0x398   : >> { %856 = vst [vmem:[%s1537_s30] sm:$0xff] %v855_v48  ;;  %858 = vst [vmem:[%s1537_s30 + $0x8] sm:$0xff] %v857_v49  ;;  %p860_p4 = scmp.ge.s32.totalorder %s859_s14, %s1784_s27  ;;  %p848_p6 = scmp.ge.s32.totalorder %s849_s20, %s1784_s27 }
 0x39a   : >> { %s1843_s14 = smov (%p860_p4, %s859_s14), 0  ;;  %851 = sbr.rel (!%p848_p6) target bundleno = 919 (0x397), region = 237 }
 0x39b   : >> { %s1122_s22 = sshll.u32 %s1843_s14, 4  ;;  %s1544_s15 = smov %s1843_s14  }
 0x39c   : >> { %s864_s13 = scalar_lea.vmem %s1734_s17, %s1122_s22 [#allocation5]   ;;  %s865_s30 = scalar_lea.vmem %s1778_s10, %s1122_s22  }
 0x3a1 PF: > { %s1794_s25 = sand.u32 1, %s1841_s21   ;;  %s1136_s23 = sshll.u32 %s1784_s27, 4 }
 0x3a2   : > { %s870_s24 = scalar_lea.vmem %s1734_s17, %s1136_s23 [#allocation5]   ;;  %s872_s18 = scalar_lea.vmem %s1778_s10, %s1136_s23  }
 0x3a3   : > { %p1127_p7 = scmp.le.s32.totalorder %s1794_s25, 0 }
 0x3a4   : > { %s1551_s11 = smov (!%p1127_p7), %s872_s18   ;;  %s1555_s16 = smov (!%p1127_p7), %s870_s24  }
 0x3a5   : > { %1033 = sbr.rel (%p1127_p7) target bundleno = 950 (0x3b6), region = 242  ;;  %s1559_s26 = smov (!%p1127_p7), 0  }
 0x3a6   : > { %s1563_s29 = smov (!%p1127_p7), 0  }
 0x3ac LB: >> { %v882_v50 = vld [vmem:[%s1557_s16] sm:$0xff]  ;;  %s884_s21 = sadd.s32 1, %s1561_s26  ;;  %s876_s29 = sadd.s32 1, %s1565_s29   ;;  %s1565_s29 = sphi %s1563_s29, %s876_s29   ;;  %s1561_s26 = sphi %s1559_s26, %s1560_s26   ;;  %s1557_s16 = sphi %s1555_s16, %s889_s16   ;;  %s1553_s11 = sphi %s1551_s11, %s890_s11  }
 0x3ad   : >> { %883 = vst [vmem:[%s1553_s11] sm:$0xff] %v882_v50  ;;  %p885_p9 = scmp.ge.s32.totalorder %s884_s21, %s1794_s25  ;;  %p875_p13 = scmp.ge.s32.totalorder %s876_s29, %s1794_s25 }
 0x3af   : >> { %s1845_s21 = smov (%p885_p9, %s884_s21), 0  ;;  %878 = sbr.rel (!%p875_p13) target bundleno = 940 (0x3ac), region = 248 }
 0x3b0   : >> { %s1128_s17 = sshll.u32 %s1845_s21, 3  ;;  %s1560_s26 = smov %s1845_s21  }
 0x3b1   : >> { %s889_s16 = scalar_lea.vmem %s870_s24, %s1128_s17 [#allocation5]   ;;  %s890_s11 = scalar_lea.vmem %s872_s18, %s1128_s17  }
 0x3b6 PF: > { %p17_p0 = scmp.ge.s32.totalorder %s1631_s9, 5   ;;  %s1831_s27 = smov %s1497_s28 }
 0x3b7   : > { %s1832_s28 = smov %s1639_s12  ;;  %s1833_s29 = smov %s1631_s9 }
 0x3b8   :  { %19 = sbr.rel (!%p17_p0) target bundleno = 2 (0x2), region = 259 }
 0x3bf   :  { %913 = vsyncpa [#allocation3], 1 }
 0x3c0   :  { %915 = vsyncpa [#allocation3 + $0x1], 1 }

</bundles_post_ra>
